<compile_context>
chip_gen: v6e
topology: v6e:2x2x1
jax: 0.10.0
libtpu: 0.0.40
codegen_flags: <defaults>
</compile_context>

<pallas_src>
import jax
import jax.numpy as jnp
from jax.experimental import pallas as pl
from jax.experimental.pallas import tpu as pltpu


def _self_attention_kernel(q_ref, kt_ref, v_ref, x_ref, gamma_ref, o_ref,
                           m_sc, l_sc, acc_sc):
    # q_ref : (1, Cq, Tq)  query projection (ki-invariant, fetched once per qi)
    # kt_ref: (1, Tk, Cq)  key projection, pre-transposed (lane dim = Cq)
    # v_ref : (1, C, Tk)   value projection (lane-dense in keys)
    # x_ref : (1, C, Tq)   residual input (f32, ki-invariant)
    # gamma_ref: (1,) SMEM scalar           o_ref: (1, C, Tq) f32
    # scratch: m_sc/l_sc (1, Tq) running max/sum, acc_sc (C, Tq) f32 accumulator
    ki = pl.program_id(2)

    @pl.when(ki == 0)
    def _():
        m_sc[...] = jnp.full(m_sc.shape, -jnp.inf, jnp.float32)
        l_sc[...] = jnp.zeros(l_sc.shape, jnp.float32)
        acc_sc[...] = jnp.zeros(acc_sc.shape, jnp.float32)

    # energy^T tile: e[k, q] = sum_c K[c, k] * Q[c, q]   (standard MXU dot,
    # contraction depth = C//8, no in-kernel transposes)
    e = jnp.dot(kt_ref[0], q_ref[0],
                preferred_element_type=jnp.float32)                   # (Tk, Tq)

    # online softmax over the key axis (sublane axis 0)
    m_new = jnp.maximum(m_sc[...], jnp.max(e, axis=0, keepdims=True))  # (1, Tq)
    alpha = jnp.exp(m_sc[...] - m_new)                                 # (1, Tq)
    p = jnp.exp(e - m_new)                                             # (Tk, Tq)
    l_sc[...] = alpha * l_sc[...] + jnp.sum(p, axis=0, keepdims=True)
    m_sc[...] = m_new

    # accumulate attention-weighted values: (C, Tk) @ (Tk, Tq)
    acc_sc[...] = alpha * acc_sc[...] + jnp.dot(
        v_ref[0], p.astype(v_ref.dtype), preferred_element_type=jnp.float32)

    @pl.when(ki == pl.num_programs(2) - 1)
    def _():
        inv_l = pl.reciprocal(l_sc[...], approx=True)                  # once per qi
        o_ref[0] = (gamma_ref[0] * (acc_sc[...] * inv_l)
                    + x_ref[0].astype(jnp.float32)).astype(o_ref.dtype)


def _vmem_budget_bytes():
    """Per-generation VMEM budget (leave headroom for compiler internals)."""
    try:
        phys = pltpu.get_tpu_info().vmem_capacity_bytes   # 128 MiB v5e/v6e, 64 MiB v7x
    except Exception:
        phys = 64 << 20                                   # conservative (v7x per-TC)
    return max(32 << 20, phys - (16 << 20))


def _vmem_bytes_estimate(C, Cq, tq, tk, esize):
    """Rough pipelined VMEM footprint (bytes) for one grid step."""
    lane = 128
    cq_pad = ((Cq + lane - 1) // lane) * lane
    buf = 2                                   # double-buffered pipeline blocks
    q_in = buf * esize * Cq * tq
    kt_in = buf * esize * tk * cq_pad
    v_in = buf * esize * C * tk
    x_in = buf * 4 * C * tq
    out = buf * 4 * C * tq
    scratch = 4 * (2 * 8 * tq + C * tq)       # m/l (sublane-padded) + f32 acc
    tmp = 3 * 4 * tk * tq                     # e / p / exp f32 temporaries
    return int(1.15 * (q_in + kt_in + v_in + x_in + out + scratch + tmp))


def _pick_tiles(N, C, Cq, B, esize, budget, tq=None, tk=None):
    if N % 128 != 0:
        # Whole-axis blocks (block shape equal to the full dim is always legal).
        # TODO(synk): pad/mask N to a multiple of 128 instead of whole-axis tiles.
        tq = tq if tq is not None else N
        tk = tk if tk is not None else N
    cands = [t for t in range(128, N + 1, 128) if N % t == 0] or [N]
    if tk is None:
        # Key tile: 256-512 keeps the (Tk, Tq) energy matmul MXU-friendly.
        tk = max([t for t in cands if t <= 512], default=cands[-1])
    if tq is None:
        # Query tile: as large as the VMEM budget allows (key/value re-stream
        # traffic scales as N^2 * C / Tq, so bigger Tq is the main DMA lever).
        tq = cands[0]
        for t in cands:
            if _vmem_bytes_estimate(C, Cq, t, tk, esize) <= budget:
                tq = max(tq, t)
        # v7x megacore balance: keep B * (N // tq) >= 2 so both TCs get work.
        if B * (N // tq) < 2 and tq >= 256 and N % (tq // 2) == 0:
            tq //= 2
    assert N % tq == 0 and N % tk == 0, "tile sizes must divide N = W*H"
    est = _vmem_bytes_estimate(C, Cq, tq, tk, esize)
    if est > budget:
        raise ValueError(
            f"tiles tq={tq}, tk={tk} need ~{est >> 20} MiB VMEM "
            f"(> budget {budget >> 20} MiB); choose smaller tiles")
    return tq, tk


def self_attention_block(x_nchw, wq, bq, wk, bk, wv, bv, gamma, *,
                         tq=None, tk=None, compute_dtype=jnp.bfloat16):
    """SAGAN self-attention forward.

    x_nchw: (B, C, W, H).  wq/wk: (C//8, C), wv: (C, C), biases 1-D, gamma scalar.
    compute_dtype: dtype of the streamed Q/K/V matmul operands (bf16 by default;
    accumulation, softmax state, residual and output are always f32).
    """
    B, C, W, H = x_nchw.shape
    N = W * H
    Cq = wq.shape[0]
    x = x_nchw.reshape(B, C, N).astype(jnp.float32)          # free view, no transpose

    # 1x1 convs == per-pixel matmuls; do them once here so the kernel never
    # repeats the projections per key tile.  Biases are folded in exactly.
    wq_f, wk_f, wv_f = (w.astype(jnp.float32) for w in (wq, wk, wv))
    q = (jnp.einsum('oc,bcn->bon', wq_f, x)
         + bq.astype(jnp.float32)[None, :, None]).astype(compute_dtype)   # (B, Cq, N)
    kt = (jnp.einsum('oc,bcn->bno', wk_f, x)
          + bk.astype(jnp.float32)[None, None, :]).astype(compute_dtype)  # (B, N, Cq)
    v = (jnp.einsum('oc,bcn->bon', wv_f, x)
         + bv.astype(jnp.float32)[None, :, None]).astype(compute_dtype)   # (B, C, N)
    gamma_f = jnp.asarray(gamma, jnp.float32).reshape(1)                  # SMEM scalar

    vmem_limit = _vmem_budget_bytes()
    esize = jnp.dtype(compute_dtype).itemsize
    tq, tk = _pick_tiles(N, C, Cq, B, esize, int(0.75 * vmem_limit), tq=tq, tk=tk)
    grid = (B, N // tq, N // tk)

    # NOTE: for very small C on v5e, pipeline_mode=pl.Buffered(3) on the kt/v
    # specs can hide exposed DMA; left at the default depth here.
    out = pl.pallas_call(
        _self_attention_kernel,
        out_shape=jax.ShapeDtypeStruct((B, C, N), jnp.float32),
        grid_spec=pltpu.PrefetchScalarGridSpec(
            num_scalar_prefetch=0,
            grid=grid,
            in_specs=[
                pl.BlockSpec((1, Cq, tq), lambda b, qi, ki: (b, 0, qi)),  # Q
                pl.BlockSpec((1, tk, Cq), lambda b, qi, ki: (b, ki, 0)),  # K^T
                pl.BlockSpec((1, C, tk),  lambda b, qi, ki: (b, 0, ki)),  # V
                pl.BlockSpec((1, C, tq),  lambda b, qi, ki: (b, 0, qi)),  # residual x
                pl.BlockSpec(memory_space=pltpu.MemorySpace.SMEM),        # gamma
            ],
            out_specs=pl.BlockSpec((1, C, tq), lambda b, qi, ki: (b, 0, qi)),
            scratch_shapes=[
                pltpu.VMEM((1, tq), jnp.float32),   # running max
                pltpu.VMEM((1, tq), jnp.float32),   # running sum
                pltpu.VMEM((C, tq), jnp.float32),   # output accumulator
            ],
        ),
        compiler_params=pltpu.CompilerParams(
            dimension_semantics=("parallel", "parallel", "arbitrary"),
            vmem_limit_bytes=vmem_limit),
    )(q, kt, v, x, gamma_f)

    return out.reshape(B, C, W, H)


def _reference(x_nchw, wq, bq, wk, bk, wv, bv, gamma):
    """Pure-JAX reference mirroring the PyTorch forward exactly (f32)."""
    B, C, W, H = x_nchw.shape
    N = W * H
    x = x_nchw.reshape(B, C, N)                                 # (B, C, N)
    q = jnp.einsum('oc,bcn->bon', wq, x) + bq[None, :, None]    # (B, Cq, N)
    k = jnp.einsum('oc,bcn->bon', wk, x) + bk[None, :, None]
    v = jnp.einsum('oc,bcn->bon', wv, x) + bv[None, :, None]    # (B, C, N)
    energy = jnp.einsum('bqn,bqm->bnm', q, k)                   # (B, N, N)
    attn = jax.nn.softmax(energy, axis=-1)
    out = jnp.einsum('bcm,bnm->bcn', v, attn)                   # (B, C, N)
    return gamma * out.reshape(B, C, W, H) + x_nchw


if __name__ == "__main__":
    B, C, W, H = 2, 16, 16, 16          # channels must be >= 8 (C // 8 q/k dims)
    Cq = C // 8

    key = jax.random.PRNGKey(0)
    kx, k1, k2, k3, k4, k5, k6 = jax.random.split(key, 7)

    x = jax.random.normal(kx, (B, C, W, H), jnp.float32)
    wq = jax.random.normal(k1, (Cq, C), jnp.float32) * 0.1
    bq = jax.random.normal(k2, (Cq,), jnp.float32) * 0.1
    wk = jax.random.normal(k3, (Cq, C), jnp.float32) * 0.1
    bk = jax.random.normal(k4, (Cq,), jnp.float32) * 0.1
    wv = jax.random.normal(k5, (C, C), jnp.float32) * 0.1
    bv = jax.random.normal(k6, (C,), jnp.float32) * 0.1
    # PyTorch inits gamma to 0 (which hides attention bugs); use nonzero value.
    gamma = jnp.float32(0.5)

    ref = _reference(x, wq, bq, wk, bk, wv, bv, gamma)

    # 1) f32 operands with forced 128-tiles: exercises the multi-key-tile
    #    online-softmax accumulation path; tight tolerance.
    out_f32 = self_attention_block(x, wq, bq, wk, bk, wv, bv, gamma,
                                   tq=128, tk=128, compute_dtype=jnp.float32)
    out_f32 = jax.block_until_ready(out_f32)
    assert out_f32.shape == (B, C, W, H)
    err32 = float(jnp.max(jnp.abs(out_f32 - ref)))
    assert jnp.allclose(out_f32, ref, atol=1e-3, rtol=1e-3), \
        f"f32 path mismatch vs reference (max abs err {err32})"

    # 2) default performance path: bf16 matmul operands, auto (budget-driven)
    #    tiles, f32 accumulation / softmax state / residual.
    out_bf16 = self_attention_block(x, wq, bq, wk, bk, wv, bv, gamma)
    out_bf16 = jax.block_until_ready(out_bf16)
    assert out_bf16.shape == (B, C, W, H)
    err16 = float(jnp.max(jnp.abs(out_bf16 - ref)))
    assert jnp.allclose(out_bf16, ref, atol=3e-2, rtol=3e-2), \
        f"bf16 path mismatch vs reference (max abs err {err16})"

    print("KERNEL_OK")
</pallas_src>

<mosaic_0001>
module attributes {stable_mosaic.version = 11 : i64} {
  func.func @_self_attention_kernel(%arg0: i32, %arg1: i32, %arg2: i32, %arg3: memref<1x2x128xf32, #tpu.memory_space<vmem>>, %arg4: memref<1x128x2xf32, #tpu.memory_space<vmem>>, %arg5: memref<1x16x128xf32, #tpu.memory_space<vmem>>, %arg6: memref<1x16x128xf32, #tpu.memory_space<vmem>>, %arg7: memref<1xf32, #tpu.memory_space<smem>>, %arg8: memref<1x16x128xf32, #tpu.memory_space<vmem>>, %arg9: memref<1x128xf32, #tpu.memory_space<vmem>>, %arg10: memref<1x128xf32, #tpu.memory_space<vmem>>, %arg11: memref<16x128xf32, #tpu.memory_space<vmem>>) attributes {dimension_semantics = [#tpu.dimension_semantics<parallel>, #tpu.dimension_semantics<parallel>, #tpu.dimension_semantics<arbitrary>], iteration_bounds = array<i64: 2, 2, 2>, scalar_prefetch = 0 : i64, scratch_operands = 3 : i64, tpu.core_type = #tpu.core_type<tc>, window_params = [{transform_indices = @transform_0, window_bounds = array<i64: 1, 2, 128>}, {transform_indices = @transform_1, window_bounds = array<i64: 1, 128, 2>}, {transform_indices = @transform_2, window_bounds = array<i64: 1, 16, 128>}, {transform_indices = @transform_3, window_bounds = array<i64: 1, 16, 128>}, {transform_indices = @transform_4, window_bounds = array<i64: 1>}, {transform_indices = @transform_5, window_bounds = array<i64: 1, 16, 128>}]} {
    %c0_i32 = arith.constant 0 : i32
    %0 = arith.cmpi eq, %arg2, %c0_i32 : i32
    %1 = arith.extui %0 : i1 to i32
    %c0_i32_0 = arith.constant 0 : i32
    %2 = arith.cmpi ne, %1, %c0_i32_0 : i32
    scf.if %2 {
      %cst_27 = arith.constant 0xFF800000 : f32
      %36 = vector.broadcast %cst_27 : f32 to vector<1x128xf32>
      %c0_28 = arith.constant 0 : index
      %c0_29 = arith.constant 0 : index
      %37 = vector.load %arg9[%c0_28, %c0_29] : memref<1x128xf32, #tpu.memory_space<vmem>>, vector<1x128xf32>
      tpu.vector_store %arg9[%c0_28, %c0_29], %36 {strides = array<i32>} : memref<1x128xf32, #tpu.memory_space<vmem>>, vector<1x128xf32>,
      %cst_30 = arith.constant 0.000000e+00 : f32
      %38 = vector.broadcast %cst_30 : f32 to vector<1x128xf32>
      %c0_31 = arith.constant 0 : index
      %c0_32 = arith.constant 0 : index
      %39 = vector.load %arg10[%c0_31, %c0_32] : memref<1x128xf32, #tpu.memory_space<vmem>>, vector<1x128xf32>
      tpu.vector_store %arg10[%c0_31, %c0_32], %38 {strides = array<i32>} : memref<1x128xf32, #tpu.memory_space<vmem>>, vector<1x128xf32>,
      %cst_33 = arith.constant 0.000000e+00 : f32
      %40 = vector.broadcast %cst_33 : f32 to vector<16x128xf32>
      %c0_34 = arith.constant 0 : index
      %c0_35 = arith.constant 0 : index
      %41 = vector.load %arg11[%c0_34, %c0_35] : memref<16x128xf32, #tpu.memory_space<vmem>>, vector<16x128xf32>
      tpu.vector_store %arg11[%c0_34, %c0_35], %40 {strides = array<i32>} : memref<16x128xf32, #tpu.memory_space<vmem>>, vector<16x128xf32>,
    } else {
    }
    %c0 = arith.constant 0 : index
    %c0_1 = arith.constant 0 : index
    %c0_2 = arith.constant 0 : index
    %3 = vector.load %arg4[%c0, %c0_1, %c0_2] : memref<1x128x2xf32, #tpu.memory_space<vmem>>, vector<1x128x2xf32>
    %4 = vector.shape_cast %3 : vector<1x128x2xf32> to vector<128x2xf32>
    %c0_3 = arith.constant 0 : index
    %c0_4 = arith.constant 0 : index
    %c0_5 = arith.constant 0 : index
    %5 = vector.load %arg3[%c0_3, %c0_4, %c0_5] : memref<1x2x128xf32, #tpu.memory_space<vmem>>, vector<1x2x128xf32>
    %6 = vector.shape_cast %5 : vector<1x2x128xf32> to vector<2x128xf32>
    %cst = arith.constant dense<0.000000e+00> : vector<128x128xf32>
    %7 = tpu.matmul %4, %6, %cst {dimension_numbers = #tpu.dot_dimension_numbers<[1], [0], [0], [1], [0, 0, 1, 1], [], []>} : vector<128x2xf32>, vector<2x128xf32>, vector<128x128xf32> -> vector<128x128xf32>
    %c0_6 = arith.constant 0 : index
    %c0_7 = arith.constant 0 : index
    %8 = vector.load %arg9[%c0_6, %c0_7] : memref<1x128xf32, #tpu.memory_space<vmem>>, vector<1x128xf32>
    %cst_8 = arith.constant dense<0xFF800000> : vector<128xf32>
    %9 = vector.multi_reduction <maximumf>, %7, %cst_8 [0] : vector<128x128xf32> to vector<128xf32>
    %10 = vector.shape_cast %9 : vector<128xf32> to vector<1x128xf32>
    %11 = arith.maximumf %8, %10 : vector<1x128xf32>
    %c0_9 = arith.constant 0 : index
    %c0_10 = arith.constant 0 : index
    %12 = vector.load %arg9[%c0_9, %c0_10] : memref<1x128xf32, #tpu.memory_space<vmem>>, vector<1x128xf32>
    %13 = arith.subf %12, %11 : vector<1x128xf32>
    %14 = math.exp %13 : vector<1x128xf32>
    %15 = vector.broadcast %11 : vector<1x128xf32> to vector<128x128xf32>
    %16 = arith.subf %7, %15 : vector<128x128xf32>
    %17 = math.exp %16 : vector<128x128xf32>
    %c0_11 = arith.constant 0 : index
    %c0_12 = arith.constant 0 : index
    %18 = vector.load %arg10[%c0_11, %c0_12] : memref<1x128xf32, #tpu.memory_space<vmem>>, vector<1x128xf32>
    %19 = arith.mulf %14, %18 : vector<1x128xf32>
    %cst_13 = arith.constant dense<0.000000e+00> : vector<128xf32>
    %20 = vector.multi_reduction <add>, %17, %cst_13 [0] : vector<128x128xf32> to vector<128xf32>
    %21 = vector.shape_cast %20 : vector<128xf32> to vector<1x128xf32>
    %22 = arith.addf %19, %21 : vector<1x128xf32>
    %c0_14 = arith.constant 0 : index
    %c0_15 = arith.constant 0 : index
    %23 = vector.load %arg10[%c0_14, %c0_15] : memref<1x128xf32, #tpu.memory_space<vmem>>, vector<1x128xf32>
    tpu.vector_store %arg10[%c0_14, %c0_15], %22 {strides = array<i32>} : memref<1x128xf32, #tpu.memory_space<vmem>>, vector<1x128xf32>,
    %c0_16 = arith.constant 0 : index
    %c0_17 = arith.constant 0 : index
    %24 = vector.load %arg9[%c0_16, %c0_17] : memref<1x128xf32, #tpu.memory_space<vmem>>, vector<1x128xf32>
    tpu.vector_store %arg9[%c0_16, %c0_17], %11 {strides = array<i32>} : memref<1x128xf32, #tpu.memory_space<vmem>>, vector<1x128xf32>,
    %c0_18 = arith.constant 0 : index
    %c0_19 = arith.constant 0 : index
    %25 = vector.load %arg11[%c0_18, %c0_19] : memref<16x128xf32, #tpu.memory_space<vmem>>, vector<16x128xf32>
    %26 = vector.broadcast %14 : vector<1x128xf32> to vector<16x128xf32>
    %27 = arith.mulf %26, %25 : vector<16x128xf32>
    %c0_20 = arith.constant 0 : index
    %c0_21 = arith.constant 0 : index
    %c0_22 = arith.constant 0 : index
    %28 = vector.load %arg5[%c0_20, %c0_21, %c0_22] : memref<1x16x128xf32, #tpu.memory_space<vmem>>, vector<1x16x128xf32>
    %29 = vector.shape_cast %28 : vector<1x16x128xf32> to vector<16x128xf32>
    %cst_23 = arith.constant dense<0.000000e+00> : vector<16x128xf32>
    %30 = tpu.matmul %29, %17, %cst_23 {dimension_numbers = #tpu.dot_dimension_numbers<[1], [0], [0], [1], [0, 0, 1, 1], [], []>} : vector<16x128xf32>, vector<128x128xf32>, vector<16x128xf32> -> vector<16x128xf32>
    %31 = arith.addf %27, %30 : vector<16x128xf32>
    %c0_24 = arith.constant 0 : index
    %c0_25 = arith.constant 0 : index
    %32 = vector.load %arg11[%c0_24, %c0_25] : memref<16x128xf32, #tpu.memory_space<vmem>>, vector<16x128xf32>
    tpu.vector_store %arg11[%c0_24, %c0_25], %31 {strides = array<i32>} : memref<16x128xf32, #tpu.memory_space<vmem>>, vector<16x128xf32>,
    %c1_i32 = arith.constant 1 : i32
    %33 = arith.cmpi eq, %arg2, %c1_i32 : i32
    %34 = arith.extui %33 : i1 to i32
    %c0_i32_26 = arith.constant 0 : i32
    %35 = arith.cmpi ne, %34, %c0_i32_26 : i32
    scf.if %35 {
      %c0_27 = arith.constant 0 : index
      %c0_28 = arith.constant 0 : index
      %36 = vector.load %arg10[%c0_27, %c0_28] : memref<1x128xf32, #tpu.memory_space<vmem>>, vector<1x128xf32>
      %37 = tpu.reciprocal %36 {approx = true} : vector<1x128xf32> -> vector<1x128xf32>
      %c0_29 = arith.constant 0 : index
      %38 = memref.load %arg7[%c0_29] : memref<1xf32, #tpu.memory_space<smem>>
      %c0_30 = arith.constant 0 : index
      %c0_31 = arith.constant 0 : index
      %39 = vector.load %arg11[%c0_30, %c0_31] : memref<16x128xf32, #tpu.memory_space<vmem>>, vector<16x128xf32>
      %40 = vector.broadcast %37 : vector<1x128xf32> to vector<16x128xf32>
      %41 = arith.mulf %39, %40 : vector<16x128xf32>
      %42 = vector.broadcast %38 : f32 to vector<16x128xf32>
      %43 = arith.mulf %42, %41 : vector<16x128xf32>
      %c0_32 = arith.constant 0 : index
      %c0_33 = arith.constant 0 : index
      %c0_34 = arith.constant 0 : index
      %44 = vector.load %arg6[%c0_32, %c0_33, %c0_34] : memref<1x16x128xf32, #tpu.memory_space<vmem>>, vector<1x16x128xf32>
      %45 = vector.shape_cast %44 : vector<1x16x128xf32> to vector<16x128xf32>
      %46 = arith.addf %43, %45 : vector<16x128xf32>
      %c0_35 = arith.constant 0 : index
      %c0_36 = arith.constant 0 : index
      %c0_37 = arith.constant 0 : index
      %47 = vector.load %arg8[%c0_35, %c0_36, %c0_37] : memref<1x16x128xf32, #tpu.memory_space<vmem>>, vector<1x16x128xf32>
      %48 = vector.shape_cast %47 : vector<1x16x128xf32> to vector<16x128xf32>
      %49 = vector.shape_cast %46 : vector<16x128xf32> to vector<1x16x128xf32>
      tpu.vector_store %arg8[%c0_35, %c0_36, %c0_37], %49 {strides = array<i32>} : memref<1x16x128xf32, #tpu.memory_space<vmem>>, vector<1x16x128xf32>,
    } else {
    }
    return
  }
  func.func @transform_0(%arg0: i32, %arg1: i32, %arg2: i32) -> (i32, i32, i32) {
    %c0_i32 = arith.constant 0 : i32
    %c0_i32_0 = arith.constant 0 : i32
    return %arg0, %c0_i32, %arg1 : i32, i32, i32
  }
  func.func @transform_1(%arg0: i32, %arg1: i32, %arg2: i32) -> (i32, i32, i32) {
    %c0_i32 = arith.constant 0 : i32
    %c0_i32_0 = arith.constant 0 : i32
    return %arg0, %arg2, %c0_i32 : i32, i32, i32
  }
  func.func @transform_2(%arg0: i32, %arg1: i32, %arg2: i32) -> (i32, i32, i32) {
    %c0_i32 = arith.constant 0 : i32
    %c0_i32_0 = arith.constant 0 : i32
    return %arg0, %c0_i32, %arg2 : i32, i32, i32
  }
  func.func @transform_3(%arg0: i32, %arg1: i32, %arg2: i32) -> (i32, i32, i32) {
    %c0_i32 = arith.constant 0 : i32
    %c0_i32_0 = arith.constant 0 : i32
    return %arg0, %c0_i32, %arg1 : i32, i32, i32
  }
  func.func @transform_4(%arg0: i32, %arg1: i32, %arg2: i32) -> i32 {
    %c0_i32 = arith.constant 0 : i32
    %c0_i32_0 = arith.constant 0 : i32
    return %c0_i32 : i32
  }
  func.func @transform_5(%arg0: i32, %arg1: i32, %arg2: i32) -> (i32, i32, i32) {
    %c0_i32 = arith.constant 0 : i32
    %c0_i32_0 = arith.constant 0 : i32
    return %arg0, %c0_i32, %arg1 : i32, i32, i32
  }
}

</mosaic_0001>

<bundles_post_ra>
// kernel: tpu_custom_call.1
= control target key start
LH: loop header
LB: loop body
LE: loop exit
PB: predicated region body
PF: predicated region fallthrough
CT: control target
= control target key end

     0   :  { %s1801_s0 = inlined_call_operand.vmem [shape: f32[2,2,256], index: 0, kind: input, shape index: {}]   ;;  %s1802_s1 = inlined_call_operand.vmem [shape: f32[2,256,2], index: 1, kind: input, shape index: {}]   ;;  %s1803_s2 = inlined_call_operand.vmem [shape: f32[2,16,256], index: 2, kind: input, shape index: {}]   ;;  %s1804_s3 = inlined_call_operand.vmem [shape: f32[2,16,256], index: 3, kind: input, shape index: {}]   ;;  %s1805_s4 = inlined_call_operand.<no memory space> [shape: f32[1], index: 4, kind: input, shape index: {}]   ;;  %s1806_s5 = inlined_call_operand.hbm [shape: f32[2,16,256], index: 5, kind: output, shape index: {}]  }
   0x1   :  { %1817 = sst [smem:[#allocation21_spill]] %s1803_s2 }
   0x2   :  { %1818 = sst [smem:[#allocation22_spill]] %s1804_s3 }
   0x3   :  { %10 = sst [smem:[#allocation5]] %s1805_s4 }
   0x4   :  { %11 = vsyncpa [#allocation9], 0 }
   0x5   :  { %13 = vsyncpa [#allocation9 + $0x1], 0  ;;  %s1472_s20 = smov 0   ;;  %s1474_s21 = smov 0  }
   0x6   :  { %s1476_s22 = smov 0   ;;  %s1478_s23 = smov 0  }
   0x7   :  { %s1480_s24 = smov 0   ;;  %s1482_s25 = smov 0  }
   0x8   :  { %s1484_s26 = smov 0   ;;  %s1486_s27 = smov 0  }
   0x9   :  { %s1488_s28 = smov 0   ;;  %s1490_s4 = smov 0  }
   0xa   :  { %s1492_s29 = smov 0   ;;  %s1494_s30 = smov 0  }
   0xb LB: > { %1819 = sst [smem:[#allocation11_spill]] %s1387_s20  ;;  %s1024_s6 = sadd.s32 4294967295, %s1431_s30   ;;  %s1431_s30 = sphi %s1494_s30, %s19_s30   ;;  %s1427_s29 = sphi %s1492_s29, %s1845_s29   ;;  %s1423_s4 = sphi %s1490_s4, %s1844_s4   ;;  %s1419_s28 = sphi %s1488_s28, %s1843_s28   ;;  %s1415_s27 = sphi %s1486_s27, %s1842_s27   ;;  %s1411_s26 = sphi %s1484_s26, %s1841_s26   ;;  %s1407_s25 = sphi %s1482_s25, %s1840_s25   ;;  %s1403_s24 = sphi %s1480_s24, %s1839_s24   ;;  %s1399_s23 = sphi %s1478_s23, %s1838_s23   ;;  %s1395_s22 = sphi %s1476_s22, %s1848_s22   ;;  %s1391_s21 = sphi %s1474_s21, %s1847_s21   ;;  %s1387_s20 = sphi %s1472_s20, %s1846_s20  }
   0xc   : > { %1820 = sst [smem:[#allocation12_spill]] %s1403_s24  ;;  %s1025_s7 = sadd.s32 4294967294, %s1431_s30  }
   0xd   : > { %1821 = sst [smem:[#allocation13_spill]] %s1419_s28  ;;  %s31_s8 = sadd.s32 1, %s1419_s28 }
   0xe   : > { %1822 = sst [smem:[#allocation14_spill]] %s1423_s4  ;;  %p32_p0 = scmp.ge.s32.totalorder %s31_s8, 2 }
   0xf   : > { %1823 = sst [smem:[#allocation15_spill]] %s1427_s29  ;;  %s34_s9 = sadd.s32 1, %s1423_s4 }
  0x10   : > { %s38_s10 = sadd.s32 1, %s1427_s29  ;;  %p110_p1 = scmp.ne.s32.totalorder %s1403_s24, %s1399_s23 }
  0x11   : > { %s1850_s8 = smov (%p32_p0, %s31_s8), 0  ;;  %s1852_s9 = smov (!%p32_p0, %s34_s9), %s1423_s4 }
  0x12   : > { %1824 = sst [smem:[#allocation16_spill]] %s1850_s8  ;;  %s103_s11 = sadd.s32 1, %s1403_s24 }
  0x13   : > { %p111_p2 = scmp.eq.s32.totalorder %s1431_s30, 0  ;;  %p36_p3 = scmp.ge.s32.totalorder %s1852_s9, 2 }
  0x14   : > { %s99_s12 = ssub.s32 %s1419_s28, %s1850_s8  ;;  %p138_p5 = scmp.ne.s32.totalorder %s1395_s22, %s1391_s21 }
  0x15   : > { %p1546_p4 = por %p111_p2, %p110_p1  ;;  %s1854_s9 = smov (%p36_p3, %s1852_s9), 0 }
  0x16   : > { %1826 = sst [smem:[#allocation17_spill]] %s1854_s9  ;;  %s1856_s10 = smov (!%p36_p3, %s38_s10), %s1427_s29 }
  0x17   : > { %s127_s14 = ssub.s32 %s1423_s4, %s1854_s9  ;;  %p1557_p6 = por %p138_p5, %p111_p2 }
  0x18   : > { %p40_p7 = scmp.ge.s32.totalorder %s1856_s10, 2  ;;  %p191_p8 = scmp.eq.s32.totalorder %s1024_s6, 7 }
  0x19   : > { %p196_p9 = scmp.ne.s32.totalorder %s1391_s21, %s1387_s20  ;;  %p197_p10 = scmp.eq.s32.totalorder %s1025_s7, 7 }
  0x1a   : > { %s1858_s10 = smov (%p40_p7, %s1856_s10), 0  ;;  %p1565_p11 = por %p191_p8, %p138_p5 }
  0x1b   : > { %1828 = sst [smem:[#allocation18_spill]] %s1858_s10  ;;  %p1569_p12 = por %p197_p10, %p196_p9 }
  0x1c   : > { %s98_s18 = ssub.s32 %s1427_s29, %s1858_s10  ;;  %s131_s19 = sadd.s32 1, %s1395_s22 }
  0x1d   : > { %s1830_s17 = scalar_select %p1569_p12, 1, 0 }
  0x1e   : > { %s100_s9 = sor.u32 %s99_s12, %s98_s18  ;;  %s128_s8 = sor.u32 %s127_s14, %s98_s18 }
  0x1f   : > { %1831 = sst [smem:[#allocation19_spill]] %s1830_s17  ;;  %p101_p13 = scmp.eq.s32.totalorder %s100_s9, 0 }
  0x20   : > { %p129_p0 = scmp.eq.s32.totalorder %s128_s8, 0  ;;  %p1027_p1 = scmp.ge.s32.totalorder %s1431_s30, 8 }
  0x21   : > { %s1577_s6 = scalar_select %p101_p13, %s1403_s24, %s103_s11  }
  0x22   : > { %s1580_s7 = scalar_select %p129_p0, %s1395_s22, %s131_s19  }
  0x23   : > { %1832 = sst [smem:[#allocation20_spill]] %s1577_s6  ;;  %216 = sbr.rel (%p1027_p1) target bundleno = 62 (0x3e), region = 20 }
  0x28   : > { %243 = sbr.rel (!%p1546_p4) target bundleno = 51 (0x33), region = 32  ;;  %s245_s17 = sand.u32 (%p1546_p4), 1, %s1403_s24  }
  0x29   : > { %s1029_s10 = sshll.u32 (%p1546_p4), %s1427_s29, 2  ;;  %s1028_s20 = sshll.u32 (%p1546_p4), %s245_s17, 4 }
  0x2a   : > { %s249_s12 = sadd.s32 (%p1546_p4), %s1419_s28, %s1029_s10  ;;  %s1833_s2 = sld [smem:[#allocation21_spill]] (%p1546_p4) }
  0x2b   : > { %s1030_s14 = sshll.u32 (%p1546_p4), %s249_s12, 3  ;;  %s247_s18 = scalar_lea.vmem (%p1546_p4), [#allocation6], %s1028_s20 }
  0x30   : > { %s251_s11 = scalar_lea.vmem %s1833_s2, %s1030_s14 }
  0x31   : > { %v282_v0 = vld [vmem:[%s251_s11] sm:$0xff]  ;;  %v284_v1 = vld [vmem:[%s251_s11 + $0x10] sm:$0xff] }
  0x32   : > { %283 = vst [vmem:[%s247_s18] sm:$0xff] %v282_v0  ;;  %285 = vst [vmem:[%s247_s18 + $0x8] sm:$0xff] %v284_v1 }
  0x33 PF: > { %291 = sbr.rel (!%p1557_p6) target bundleno = 62 (0x3e), region = 70  ;;  %s293_s13 = sand.u32 (%p1557_p6), 1, %s1395_s22  }
  0x34   : > { %s1032_s17 = sshll.u32 (%p1557_p6), %s1427_s29, 2  ;;  %s1031_s10 = sshll.u32 (%p1557_p6), %s293_s13, 4 }
  0x35   : > { %s297_s19 = sadd.s32 (%p1557_p6), %s1423_s4, %s1032_s17  ;;  %s1834_s3 = sld [smem:[#allocation22_spill]] (%p1557_p6) }
  0x36   : > { %s1033_s12 = sshll.u32 (%p1557_p6), %s297_s19, 3  ;;  %s295_s20 = scalar_lea.vmem (%p1557_p6), [#allocation7], %s1031_s10 }
  0x3b   : > { %s299_s14 = scalar_lea.vmem %s1834_s3, %s1033_s12 }
  0x3c   : > { %v330_v2 = vld [vmem:[%s299_s14] sm:$0xff]  ;;  %v332_v3 = vld [vmem:[%s299_s14 + $0x10] sm:$0xff] }
  0x3d   : > { %331 = vst [vmem:[%s295_s20] sm:$0xff] %v330_v2  ;;  %333 = vst [vmem:[%s295_s20 + $0x8] sm:$0xff] %v332_v3 }
  0x3e PF: > { %p1034_p2 = scmp.ge.s32.totalorder %s1431_s30, 1  ;;  %p338_p3 = scmp.lt.s32.totalorder %s1431_s30, 9 }
  0x40   : > { %p339_p4 = pnand %p1034_p2, %p338_p3 }
  0x41   : > { %s345_s28 = sand.u32 (!%p339_p4), 1, %s1399_s23   ;;  %s1813_s15 = sand.u32 (!%p339_p4), 1, %s1391_s21  }
  0x42   : > { %342 = sbr.rel (%p339_p4) target bundleno = 634 (0x27a), region = 108  ;;  %s1603_s8 = sshll.u32 (!%p339_p4), %s345_s28, 4 }
  0x43   : > { %s1607_s11 = sshll.u32 (!%p339_p4), %s1813_s15, 4  ;;  %p400_p5 = scmp.lt.s32.totalorder (!%p339_p4), %s1415_s27, 1 }
  0x44   : > { %p402_p6 = scmp.lt.s32.totalorder (!%p339_p4), %s1411_s26, 1  ;;  %s1040_s18 = sshll.u32 (!%p339_p4), %s1407_s25, 4 }
  0x45   : > { %p411_p7 = scmp.lt.s32.totalorder (!%p339_p4), %s1040_s18, 31  ;;  %s347_s4 = scalar_lea.vmem (!%p339_p4), [#allocation6], %s1603_s8 }
  0x46   : > { %s354_s6 = scalar_lea.vmem (!%p339_p4), [#allocation7], %s1607_s11  ;;  %s1625_s24 = scalar_lea.vmem (!%p339_p4), [#allocation8], %s1607_s11 }
  0x47   : > { %s401_s13 = scalar_select %p400_p5, %s1415_s27, 1 }
  0x48   : > { %s403_s17 = scalar_select %p402_p6, %s1411_s26, 1 }
  0x49   : > { %s1038_s10 = sshll.u32 %s401_s13, 1  ;;  %s1041_s20 = sshll.u32 %s401_s13, 5 }
  0x4a   : > { %s405_s19 = sadd.s32 %s1038_s10, %s403_s17  ;;  %s1860_s18 = smov (!%p411_p7, %s1040_s18), 31 }
  0x4b   : > { %s1039_s12 = sshll.u32 %s405_s19, 1  ;;  %s414_s28 = sadd.s32 %s1041_s20, %s1860_s18 }
  0x4c   : > { %s407_s14 = scalar_lea.vmem %s1801_s0, %s1039_s12  ;;  %s1042_s15 = sshll.u32 %s414_s28, 3 }
  0x4d   : > { %s1620_s29 = scalar_lea.vmem %s1802_s1, %s1042_s15  ;;  %p1043_p8 = scmp.ne.s32.totalorder %s1407_s25, 0 }
  0x4f   : > { %421 = sbr.rel (%p1043_p8) target bundleno = 87 (0x57), region = 120 }
  0x54   : > { %v1433_v4 = vmov -inf   ;;  %v1434_v5 = vmov 0.0  }
  0x55   : > { %422 = vst [vmem:[#allocation2] sm:$0x1] %v1433_v4  ;;  %423 = vst [vmem:[#allocation3] sm:$0x1] %v1434_v5 }
  0x56   : > { %424 = vst [vmem:[#allocation4] sm:$0xff] %v1434_v5  ;;  %425 = vst [vmem:[#allocation4 + $0x8] sm:$0xff] %v1434_v5 }
  0x57 PF: > { %v442_v6 = vld [vmem:[%s407_s14] sm:$0x3]  ;;  %vm492_vm0 = vcmask 1041408   ;;  %vm443_vm1 = vcmask 15360   ;;  %v427_v8 = vld [vmem:[%s1620_s29 + $0x8] sm:$0xff]  ;;  %v428_v9 = vld [vmem:[%s1620_s29 + $0x10] sm:$0xff]  ;;  %v668_v57 = vlaneseq }
  0x58   : > { %v426_v7 = vld [vmem:[%s1620_s29] sm:$0xff]  ;;  %1102 = vmatprep.subr.msk.mxu0 %vm492_vm0, %v442_v6  ;;  %v429_v10 = vld [vmem:[%s1620_s29 + $0x18] sm:$0xff]  ;;  %v431_v12 = vld [vmem:[%s1620_s29 + $0x28] sm:$0xff]  ;;  %p1061_p9 = scmp.ne.s32.totalorder %s1407_s25, 1 }
  0x59   : > { %1104 = vmatprep.mubr.msk.f32.mxu0 %vm443_vm1, %v426_v7  ;;  %1103 = vmatpush3.msk.msra.mxu0 %vm492_vm0, %v442_v6  ;;  %v430_v11 = vld [vmem:[%s1620_s29 + $0x20] sm:$0xff]  ;;  %v432_v13 = vld [vmem:[%s1620_s29 + $0x30] sm:$0xff]  ;;  %v433_v14 = vld [vmem:[%s1620_s29 + $0x38] sm:$0xff]  ;;  %v669_v60 = vshrl.u32 %v668_v57, 7  ;;  %s844_s2 = sld [smem:[#allocation5]] (!%p1061_p9) }
  0x5a   : > { %1105 = vmatmul.mubr.msk.f32.vlgmr.msra.gmra.mxu0 %vm443_vm1, %v427_v8  ;;  %v434_v15 = vld [vmem:[%s1620_s29 + $0x40] sm:$0xff]  ;;  %v435_v16 = vld [vmem:[%s1620_s29 + $0x48] sm:$0xff]  ;;  %v436_v17 = vld [vmem:[%s1620_s29 + $0x50] sm:$0xff] }
  0x5b   : > { %1107 = vmatprep.mubr.msk.f32.mxu0 %vm443_vm1, %v428_v9  ;;  %v437_v18 = vld [vmem:[%s1620_s29 + $0x58] sm:$0xff]  ;;  %v438_v19 = vld [vmem:[%s1620_s29 + $0x60] sm:$0xff]  ;;  %v439_v20 = vld [vmem:[%s1620_s29 + $0x68] sm:$0xff]  ;;  %v1686_v0 = vsub.s32 0, %v669_v60 }
  0x5c   : > { %v440_v21 = vld [vmem:[%s1620_s29 + $0x70] sm:$0xff]  ;;  %v441_v22 = vld [vmem:[%s1620_s29 + $0x78] sm:$0xff]  ;;  %v641_v62 = vld [vmem:[#allocation2] sm:$0x1] }
  0x5d   : > { %v757_v23 = vld [vmem:[%s347_s4] sm:$0xff] }
  0x5e   : > { %1108 = vmatmul.mubr.msk.f32.gmra.mxu0 %vm443_vm1, %v429_v10  ;;  %1160 = vmatprep.mubr.f32.mxu1 %v757_v23 }
  0x5f   : > { %1110 = vmatprep.mubr.msk.f32.mxu0 %vm443_vm1, %v430_v11 }
  0x62   : > { %1111 = vmatmul.mubr.msk.f32.gmra.mxu0 %vm443_vm1, %v431_v12 }
  0x63   : > { %1113 = vmatprep.mubr.msk.f32.mxu0 %vm443_vm1, %v432_v13 }
  0x66   : > { %1114 = vmatmul.mubr.msk.f32.gmra.mxu0 %vm443_vm1, %v433_v14 }
  0x67   : > { %1116 = vmatprep.mubr.msk.f32.mxu0 %vm443_vm1, %v434_v15 }
  0x6a   : > { %1117 = vmatmul.mubr.msk.f32.gmra.mxu0 %vm443_vm1, %v435_v16 }
  0x6b   : > { %1119 = vmatprep.mubr.msk.f32.mxu0 %vm443_vm1, %v436_v17 }
  0x6e   : > { %1120 = vmatmul.mubr.msk.f32.gmra.mxu0 %vm443_vm1, %v437_v18 }
  0x6f   : > { %1122 = vmatprep.mubr.msk.f32.mxu0 %vm443_vm1, %v438_v19 }
  0x72   : > { %1123 = vmatmul.mubr.msk.f32.gmra.mxu0 %vm443_vm1, %v439_v20 }
  0x73   : > { %1125 = vmatprep.mubr.msk.f32.mxu0 %vm443_vm1, %v440_v21 }
  0x76   : > { %1126 = vmatmul.mubr.msk.f32.gmra.mxu0 %vm443_vm1, %v441_v22 }
 0x11a   : > { %v1662_v24 = vpop.f32.mrf.mxu0 }
 0x11c   : > { %v1664_v25 = vpop.f32.mrf.mxu0 }
 0x11e   : > { %v1666_v26 = vpop.f32.mrf.mxu0 }
 0x120   : > { %v1668_v27 = vpop.f32.mrf.mxu0 }
 0x122   : > { %v1670_v28 = vpop.f32.mrf.mxu0 }
 0x123   : > { %v643_v39 = vmax.f32 %v1662_v24, %v1670_v28 }
 0x124   : > { %v1672_v29 = vpop.f32.mrf.mxu0 }
 0x125   : > { %v642_v37 = vmax.f32 %v1664_v25, %v1672_v29 }
 0x126   : > { %v1674_v30 = vpop.f32.mrf.mxu0 }
 0x127   : > { %v645_v40 = vmax.f32 %v1666_v26, %v1674_v30 }
 0x128   : > { %v1676_v31 = vpop.f32.mrf.mxu0 }
 0x129   : > { %v644_v41 = vmax.f32 %v1668_v27, %v1676_v31 }
 0x12a   : > { %v1118_v32 = vpop.f32.mrf.mxu0 }
 0x12b   : > { %v647_v44 = vmax.f32 %v643_v39, %v1118_v32 }
 0x12c   : > { %v602_v33 = vpop.f32.mrf.mxu0 }
 0x12d   : > { %v646_v42 = vmax.f32 %v642_v37, %v602_v33 }
 0x12e   : > { %v1121_v34 = vpop.f32.mrf.mxu0 }
 0x12f   : > { %v649_v45 = vmax.f32 %v645_v40, %v1121_v34 }
 0x130   : > { %v612_v35 = vpop.f32.mrf.mxu0 }
 0x131   : > { %v648_v46 = vmax.f32 %v644_v41, %v612_v35 }
 0x132   : > { %v1124_v36 = vpop.f32.mrf.mxu0 }
 0x133   : > { %v651_v49 = vmax.f32 %v647_v44, %v1124_v36 }
 0x134   : > { %v622_v38 = vpop.f32.mrf.mxu0 }
 0x135   : > { %v650_v47 = vmax.f32 %v646_v42, %v622_v38 }
 0x136   : > { %v1127_v43 = vpop.f32.mrf.mxu0 }
 0x137   : > { %v653_v50 = vmax.f32 %v649_v45, %v1127_v43  ;;  %v654_v52 = vmax.f32 %v650_v47, %v651_v49 }
 0x138   : > { %v632_v48 = vpop.f32.mrf.mxu0 }
 0x139   : > { %v652_v51 = vmax.f32 %v648_v46, %v632_v48 }
 0x13b   : > { %v655_v53 = vmax.f32 %v652_v51, %v653_v50 }
 0x13d   : > { %v656_v54 = vmax.f32 %v654_v52, %v655_v53 }
 0x13f   : > { %v657_v55 = vrot.slane %v656_v54, 4 }
 0x141   : > { %v658_v56 = vmax.f32 %v656_v54, %v657_v55 }
 0x143   : > { %v659_v58 = vrot.slane %v658_v56, 2 }
 0x145   : > { %v660_v59 = vmax.f32 %v658_v56, %v659_v58 }
 0x147   : > { %v661_v61 = vrot.slane %v660_v59, 1 }
 0x149   : > { %v662_v63 = vmax.f32 %v660_v59, %v661_v61 }
 0x14b   : > { %v663_v1 = vmax.f32 %v641_v62, %v662_v63  ;;  %v758_v63 = vld [vmem:[%s347_s4 + $0x8] sm:$0xff] }
 0x14d   : > { %v664_v2 = vsub.f32 %v641_v62, %v663_v1  ;;  %v671_v3 = vrot.slane %v663_v1, %v1686_v0  ;;  %746 = vst [vmem:[#allocation2] sm:$0x1] %v663_v1 }
 0x14f   : > { %v665_v4 = vmul.f32 1.442695, %v664_v2  ;;  %v687_v5 = vsub.f32 %v632_v48, %v671_v3  ;;  %v688_v6 = vsub.f32 %v1127_v43, %v671_v3  ;;  %v686_v7 = vsub.f32 %v1124_v36, %v671_v3 }
 0x150   : > { %v685_v10 = vsub.f32 %v622_v38, %v671_v3  ;;  %v684_v12 = vsub.f32 %v1121_v34, %v671_v3  ;;  %v683_v14 = vsub.f32 %v612_v35, %v671_v3  ;;  %v682_v15 = vsub.f32 %v1118_v32, %v671_v3 }
 0x151   : > { %1271 = vpow2.f32 %v665_v4  ;;  %v719_v8 = vmul.f32 1.442695, %v688_v6  ;;  %v717_v9 = vmul.f32 1.442695, %v687_v5  ;;  %v715_v11 = vmul.f32 1.442695, %v686_v7 }
 0x152   : > { %v713_v13 = vmul.f32 1.442695, %v685_v10  ;;  %v711_v16 = vmul.f32 1.442695, %v684_v12  ;;  %v681_v17 = vsub.f32 %v602_v33, %v671_v3  ;;  %v674_v18 = vsub.f32 %v1662_v24, %v671_v3  ;;  %v721_v12 = vld [vmem:[#allocation3] sm:$0x1] }
 0x153   : > { %1273 = vpow2.f32 %v719_v8  ;;  %v709_v19 = vmul.f32 1.442695, %v683_v14  ;;  %v673_v20 = vsub.f32 %v1664_v25, %v671_v3  ;;  %v707_v21 = vmul.f32 1.442695, %v682_v15 }
 0x154   : > { %1275 = vpow2.f32 %v717_v9  ;;  %v680_v22 = vsub.f32 %v1674_v30, %v671_v3  ;;  %v705_v23 = vmul.f32 1.442695, %v681_v17  ;;  %v675_v34 = vsub.f32 %v1668_v27, %v671_v3  ;;  %v748_v17 = vld [vmem:[#allocation4 + $0x8] sm:$0xff] }
 0x155   : > { %1277 = vpow2.f32 %v715_v11  ;;  %v679_v36 = vsub.f32 %v1676_v31, %v671_v3  ;;  %v691_v35 = vmul.f32 1.442695, %v674_v18  ;;  %v676_v33 = vsub.f32 %v1666_v26, %v671_v3  ;;  %v747_v18 = vld [vmem:[#allocation4] sm:$0xff] }
 0x156   : > { %1279 = vpow2.f32 %v713_v13  ;;  %v689_v24 = vmul.f32 1.442695, %v673_v20  ;;  %v703_v37 = vmul.f32 1.442695, %v680_v22  ;;  %v678_v25 = vsub.f32 %v1670_v28, %v671_v3 }
 0x157   : > { %1281 = vpow2.f32 %v711_v16  ;;  %v677_v27 = vsub.f32 %v1672_v29, %v671_v3  ;;  %v693_v38 = vmul.f32 1.442695, %v675_v34  ;;  %v701_v39 = vmul.f32 1.442695, %v679_v36 }
 0x158   : > { %1283 = vpow2.f32 %v709_v19  ;;  %v695_v26 = vmul.f32 1.442695, %v676_v33  ;;  %v699_v28 = vmul.f32 1.442695, %v678_v25 }
 0x159   : > { %1285 = vpow2.f32 %v707_v21  ;;  %v697_v41 = vmul.f32 1.442695, %v677_v27 }
 0x15a   : > { %1287 = vpow2.f32 %v705_v23 }
 0x15b   : > { %1289 = vpow2.f32 %v691_v35 }
 0x15c   : > { %1291 = vpow2.f32 %v689_v24 }
 0x15d   : > { %1293 = vpow2.f32 %v703_v37 }
 0x15e   : > { %v1694_v32 = vpop.eup %1271  ;;  %1295 = vpow2.f32 %v693_v38 }
 0x15f   : > { %v1700_v30 = vrot.slane %v1694_v32, %v1686_v0  ;;  %1297 = vpow2.f32 %v701_v39  ;;  %v722_v14 = vmul.f32 %v1694_v32, %v721_v12 }
 0x160   : > { %v1703_v31 = vpop.eup %1273  ;;  %1299 = vpow2.f32 %v695_v26 }
 0x161   : > { %1128 = vmatprep.subr.mxu1 %v1703_v31  ;;  %v1706_v40 = vpop.eup %1275  ;;  %1301 = vpow2.f32 %v699_v28  ;;  %v756_v19 = vmul.f32 %v1700_v30, %v748_v17  ;;  %v755_v22 = vmul.f32 %v1700_v30, %v747_v18 }
 0x162   : > { %1129 = vmatpush3.msra.mxu1 %v1703_v31  ;;  %v1278_v29 = vpop.eup %1277  ;;  %1303 = vpow2.f32 %v697_v41 }
 0x163   : > { %1130 = vmatprep.subr.mxu1 %v1706_v40  ;;  %v1280_v42 = vpop.eup %1279 }
 0x164   : > { %1131 = vmatpush3.msra.mxu1 %v1706_v40  ;;  %v1282_v43 = vpop.eup %1281 }
 0x165   : > { %1132 = vmatprep.subr.mxu1 %v1278_v29  ;;  %v1284_v44 = vpop.eup %1283 }
 0x166   : > { %1133 = vmatpush3.msra.mxu1 %v1278_v29  ;;  %v1286_v45 = vpop.eup %1285 }
 0x167   : > { %1134 = vmatprep.subr.mxu1 %v1280_v42  ;;  %v1288_v46 = vpop.eup %1287 }
 0x168   : > { %1135 = vmatpush3.msra.mxu1 %v1280_v42  ;;  %v1290_v47 = vpop.eup %1289 }
 0x169   : > { %1136 = vmatprep.subr.mxu1 %v1282_v43  ;;  %v1292_v48 = vpop.eup %1291 }
 0x16a   : > { %1137 = vmatpush3.msra.mxu1 %v1282_v43  ;;  %v1294_v49 = vpop.eup %1293  ;;  %v723_v50 = vadd.f32 %v1292_v48, %v1290_v47 }
 0x16b   : > { %1138 = vmatprep.subr.mxu1 %v1284_v44  ;;  %v1296_v51 = vpop.eup %1295 }
 0x16c   : > { %1139 = vmatpush3.msra.mxu1 %v1284_v44  ;;  %v1298_v52 = vpop.eup %1297  ;;  %v724_v53 = vadd.f32 %v1296_v51, %v723_v50 }
 0x16d   : > { %1140 = vmatprep.subr.mxu1 %v1286_v45  ;;  %v1300_v54 = vpop.eup %1299 }
 0x16e   : > { %1141 = vmatpush3.msra.mxu1 %v1286_v45  ;;  %v1302_v55 = vpop.eup %1301  ;;  %v725_v56 = vadd.f32 %v1300_v54, %v724_v53 }
 0x16f   : > { %1142 = vmatprep.subr.mxu1 %v1288_v46  ;;  %v1304_v57 = vpop.eup %1303 }
 0x170   : > { %1143 = vmatpush3.msra.mxu1 %v1288_v46  ;;  %v726_v58 = vadd.f32 %v1304_v57, %v725_v56 }
 0x171   : > { %1144 = vmatprep.subr.mxu1 %v1294_v49 }
 0x172   : > { %1145 = vmatpush3.msra.mxu1 %v1294_v49  ;;  %v727_v59 = vadd.f32 %v1302_v55, %v726_v58 }
 0x173   : > { %1146 = vmatprep.subr.mxu1 %v1298_v52 }
 0x174   : > { %1147 = vmatpush3.msra.mxu1 %v1298_v52  ;;  %v728_v60 = vadd.f32 %v1298_v52, %v727_v59 }
 0x175   : > { %1148 = vmatprep.subr.mxu1 %v1302_v55 }
 0x176   : > { %1149 = vmatpush3.msra.mxu1 %v1302_v55  ;;  %v729_v61 = vadd.f32 %v1294_v49, %v728_v60 }
 0x177   : > { %1150 = vmatprep.subr.mxu1 %v1304_v57 }
 0x178   : > { %1151 = vmatpush3.msra.mxu1 %v1304_v57  ;;  %v730_v62 = vadd.f32 %v1288_v46, %v729_v61 }
 0x179   : > { %1152 = vmatprep.subr.mxu1 %v1300_v54 }
 0x17a   : > { %1153 = vmatpush3.msra.mxu1 %v1300_v54  ;;  %v731_v1 = vadd.f32 %v1286_v45, %v730_v62 }
 0x17b   : > { %1154 = vmatprep.subr.mxu1 %v1296_v51 }
 0x17c   : > { %1155 = vmatpush3.msra.mxu1 %v1296_v51  ;;  %v732_v2 = vadd.f32 %v1284_v44, %v731_v1 }
 0x17d   : > { %1156 = vmatprep.subr.mxu1 %v1290_v47 }
 0x17e   : > { %1157 = vmatpush3.msra.mxu1 %v1290_v47  ;;  %v733_v3 = vadd.f32 %v1282_v43, %v732_v2 }
 0x17f   : > { %1158 = vmatprep.subr.mxu1 %v1292_v48 }
 0x180   : > { %1159 = vmatpush3.msra.mxu1 %v1292_v48  ;;  %v734_v4 = vadd.f32 %v1280_v42, %v733_v3 }
 0x181   : > { %1161 = vmatmul.mubr.f32.vlgmr.msra.gmra.mxu1 %v758_v63 }
 0x182   : > { %v735_v5 = vadd.f32 %v1278_v29, %v734_v4 }
 0x184   : > { %v736_v6 = vadd.f32 %v1706_v40, %v735_v5 }
 0x186   : > { %v737_v7 = vadd.f32 %v1703_v31, %v736_v6 }
 0x188   : > { %v738_v8 = vrot.slane %v737_v7, 4 }
 0x18a   : > { %v739_v9 = vadd.f32 %v738_v8, %v737_v7 }
 0x18c   : > { %v740_v10 = vrot.slane %v739_v9, 2 }
 0x18e   : > { %v741_v11 = vadd.f32 %v740_v10, %v739_v9 }
 0x190   : > { %v742_v13 = vrot.slane %v741_v11, 1 }
 0x192   : > { %v743_v15 = vadd.f32 %v742_v13, %v741_v11 }
 0x194   : > { %v744_v16 = vadd.f32 %v743_v15, %v722_v14 }
 0x196   : > { %745 = vst [vmem:[#allocation3] sm:$0x1] %v744_v16 }
 0x241   : > { %v1162_v20 = vpop.f32.mrf.mxu1 }
 0x242   : > { %v835_v21 = vadd.f32 %v1162_v20, %v756_v19  ;;  %841 = sbr.rel (%p1061_p9) target bundleno = 607 (0x25f), region = 124 }
 0x243   : > { %v825_v23 = vpop.f32.mrf.mxu1 }
 0x244   : > { %837 = vst [vmem:[#allocation4 + $0x8] sm:$0xff] %v835_v21  ;;  %v834_v34 = vadd.f32 %v825_v23, %v755_v22 }
 0x246   : > { %836 = vst [vmem:[#allocation4] sm:$0xff] %v834_v34 }
 0x247   : > { %v842_v36 = vld [vmem:[#allocation3] sm:$0x1]  ;;  %v855_v37 = vstv %s844_s2  ;;  %v858_v27 = vld [vmem:[%s354_s6] sm:$0xff] }
 0x248   : > { %1305 = vrcp.f32 %v842_v36  ;;  %v859_v38 = vld [vmem:[%s354_s6 + $0x8] sm:$0xff] }
 0x24b   : > { %v846_v33 = vld [vmem:[#allocation4 + $0x8] sm:$0xff] }
 0x24d   : > { %v845_v32 = vld [vmem:[#allocation4] sm:$0xff] }
 0x255   : > { %v1306_v35 = vpop.eup %1305 }
 0x256   : > { %v851_v24 = vrot.slane %v1306_v35, %v1686_v0 }
 0x258   : > { %v853_v25 = vmul.f32 %v851_v24, %v845_v32  ;;  %v854_v30 = vmul.f32 %v851_v24, %v846_v33 }
 0x25a   : > { %v856_v31 = vmul.f32 %v855_v37, %v853_v25  ;;  %v857_v39 = vmul.f32 %v855_v37, %v854_v30 }
 0x25c   : > { %v860_v26 = vadd.f32 %v858_v27, %v856_v31  ;;  %v861_v40 = vadd.f32 %v859_v38, %v857_v39 }
 0x25e   : > { %862 = vst [vmem:[%s1625_s24] sm:$0xff] %v860_v26  ;;  %863 = vst [vmem:[%s1625_s24 + $0x8] sm:$0xff] %v861_v40 }
 0x25f PF: > { %s1063_s3 = sshll.u32 %s1415_s27, 2  ;;  %s879_s4 = sshll.u32 %s1625_s24, 4  ;;  %s1729_s4 = int_to_ptr.vmem [resolvable:$true] %s879_s4 }
 0x260   : > { %s876_s25 = sadd.s32 %s1411_s26, %s1063_s3  ;;  %s1835_s11 = sand.u32 1, %s1391_s21  }
 0x261   : > { %s1064_s29 = sshll.u32 %s876_s25, 7  ;;  %s1738_s18 = scalar_lea.sflag [#allocation9], %s1835_s11 }
 0x262   : > { %s1734_s8 = scalar_lea.hbm %s1806_s5, %s1064_s29  ;;  %s1307_s13 = scalar_lea.vmem %s1729_s4, 256 }
 0x263   : > { %p1308_p10 = scmp.ne.s32.totalorder %s1729_s4, %s1307_s13  ;;  %s1435_s24 = smov [#allocation8]  }
 0x264   : > { %s1311_s26 = sshll.u32 %s1435_s24, 4  ;;  %s1312_s26 = int_to_ptr.vmem [resolvable:$false] %s1311_s26 }
 0x265   : > { %p1309_p13 = pnand %p1308_p10, %p1565_p11  ;;  %s1313_s27 = scalar_lea.vmem %s1312_s26, 512 }
 0x266   : > { %p1314_p1 = scmp.lt.s32.totalorder %s1729_s4, %s1312_s26  ;;  %p1315_p2 = scmp.lt.s32.totalorder %s1313_s27, %s1307_s13 }
 0x267   : > { %p1310_p0 = pneg %p1309_p13 }
 0x268   : > { %p1316_p3 = por %p1315_p2, %p1314_p1 }
 0x26a   : > { %p1317_p4 = pnand %p1316_p3, %p1310_p0 }
 0x26c   : > { %1320 = shalt.err (!%p1317_p4)
}
 0x26d   : > { %s1321_s17 = scalar_lea.hbm %s1734_s8, 256  ;;  %s1325_s12 = scalar_lea.hbm %s1806_s5, 1024 }
 0x26e   : > { %p1322_p5 = scmp.ne.s32.totalorder %s1734_s8, %s1321_s17  ;;  %p1326_p8 = scmp.lt.s32.totalorder %s1734_s8, %s1806_s5 }
 0x26f   : > { %p1327_p9 = scmp.lt.s32.totalorder %s1325_s12, %s1321_s17 }
 0x270   : > { %p1323_p6 = pnand %p1322_p5, %p1565_p11 }
 0x271   : > { %p1328_p10 = por %p1327_p9, %p1326_p8 }
 0x272   : > { %p1324_p7 = pneg %p1323_p6 }
 0x274   : > { %p1329_p13 = pnand %p1328_p10, %p1324_p7 }
 0x276   : > { %1332 = shalt.err (!%p1329_p13)
}
 0x277   : > { %s1436_s14 = smov 128   ;;  %s1437_s20 = smov 256  }
 0x278   : > { %s1438_s28 = smov 8  }
 0x279   : > { %1163 = dma.vmem_to_hbm [thread:$0]  (%p1565_p11), %s1729_s4, 256, %s1734_s8, %s1738_s18, %s1436_s14, %s1437_s20, %s1438_s28  }
 0x27a PF: > { %s1836_s2 = sld [smem:[#allocation11_spill]]  ;;  %p1169_p0 = scmp.ge.s32.totalorder %s1431_s30, 2 }
 0x27c   : > { %p1166_p1 = pnand %p1169_p0, %p1569_p12 }
 0x27e   : > { %p1167_p2 = pneg %p1166_p1 }
 0x280   : > { %s894_s25 = sand.u32 1, %s1836_s2  }
 0x281   : > { %s895_s29 = scalar_lea.sflag [#allocation9], %s894_s25 }
 0x282   : > { %1382 = dma.done.wait (%p1167_p2), %s895_s29, 256  }
 0x283   : > { %1384 = vsyncadd (%p1167_p2), %s895_s29, 4294967040  ;;  %s19_s30 = sadd.s32 1, %s1431_s30   ;;  %s1838_s23 = sld [smem:[#allocation12_spill]] }
 0x284   : > { %p16_p3 = scmp.ge.s32.totalorder %s19_s30, 10   ;;  %s1839_s24 = sld [smem:[#allocation20_spill]] }
 0x285   : > { %s1840_s25 = sld [smem:[#allocation13_spill]]  ;;  %s1846_s20 = smov %s1391_s21 }
 0x286   : > { %s1841_s26 = sld [smem:[#allocation14_spill]]  ;;  %s1847_s21 = smov %s1395_s22 }
 0x287   : > { %s1842_s27 = sld [smem:[#allocation15_spill]]  ;;  %s1848_s22 = smov %s1580_s7 }
 0x288   : > { %s1843_s28 = sld [smem:[#allocation16_spill]]  ;;  %18 = sbr.rel (!%p16_p3) target bundleno = 11 (0xb), region = 178 }
 0x289   : > { %s1844_s4 = sld [smem:[#allocation17_spill]] }
 0x28a   : > { %s1845_s29 = sld [smem:[#allocation18_spill]] }
 0x28d   :  { %900 = vsyncpa [#allocation9], 1 }
 0x28e   :  { %902 = vsyncpa [#allocation9 + $0x1], 1 }

</bundles_post_ra>
